<compile_context>
chip_gen: v7x
topology: tpu7x:2x2x1
jax: 0.10.0
libtpu: 0.0.40
codegen_flags: <defaults>
</compile_context>

<pallas_src>
import jax
import jax.numpy as jnp
from jax.experimental import pallas as pl
from jax.experimental.pallas import tpu as pltpu

_LANE = 128     # lane width: feature dims padded to multiples of this
_SUBLANE = 8    # sublane width: batch tiles padded to multiples of this
_MAX_RESIDENT_WEIGHT_BYTES = 24 * 1024 * 1024  # keep fused design v7x-safe (64 MiB VMEM)


def _round_up(x: int, m: int) -> int:
    return ((x + m - 1) // m) * m


def _make_mlp_kernel(num_layers, out_pads, bias_offsets, compute_dtype):
    """Fused MLP kernel.

    Ref order: x, w0, ..., w{L-1}, bias_cat, out
    x:        (TB, in_pad0)           streamed activation tile
    w_i:      (in_pad_i, out_pad_i)   resident, lane-dense
    bias_cat: (1, sum(out_pad_i))     resident, f32
    out:      (TB, out_pad_last)
    """

    def kernel(*refs):
        x_ref = refs[0]
        w_refs = refs[1:1 + num_layers]
        b_ref = refs[1 + num_layers]
        out_ref = refs[-1]

        h = x_ref[...]
        for i in range(num_layers):
            w = w_refs[i][...]
            off = bias_offsets[i]
            b = b_ref[:, off:off + out_pads[i]]  # (1, out_pad_i) f32, static slice
            # MXU matmul (bf16 or f32 operands), f32 accumulation; bias/ReLU in f32 (VPU).
            h = jnp.dot(h.astype(compute_dtype), w,
                        preferred_element_type=jnp.float32) + b
            if i < num_layers - 1:
                h = jnp.maximum(h, 0.0)  # ReLU on hidden layers only
        out_ref[...] = h.astype(out_ref.dtype)

    return kernel


def mlp_forward(x, weights, biases, *, block_batch=None, compute_dtype=jnp.float32):
    """Fused MLP forward via a single pallas_call.

    x:       (B, x_dim) float32
    weights: list of (in_i, out_i) float32 (already transposed vs torch's (out, in))
    biases:  list of (out_i,) float32
    returns: (B, y_dim) float32
    """
    assert len(weights) == len(biases) and len(weights) >= 1
    num_layers = len(weights)
    B, x_dim = x.shape
    y_dim = weights[-1].shape[1]

    in_dims = [w.shape[0] for w in weights]
    out_dims = [w.shape[1] for w in weights]
    assert in_dims[0] == x_dim
    for i in range(1, num_layers):
        assert in_dims[i] == out_dims[i - 1]

    # --- lane-dense padding of every feature dim (zero padding keeps math exact) ---
    in_pads = [_round_up(d, _LANE) for d in in_dims]
    out_pads = [_round_up(d, _LANE) for d in out_dims]

    w_pad = []
    for w, ip, op in zip(weights, in_pads, out_pads):
        wp = jnp.zeros((ip, op), compute_dtype)
        wp = wp.at[:w.shape[0], :w.shape[1]].set(w.astype(compute_dtype))
        w_pad.append(wp)

    bias_offsets = []
    off = 0
    for op in out_pads:
        bias_offsets.append(off)
        off += op
    total_b = off
    b_cat = jnp.zeros((1, total_b), jnp.float32)
    for b, o, od in zip(biases, bias_offsets, out_dims):
        b_cat = b_cat.at[0, o:o + od].set(b.astype(jnp.float32))

    weight_bytes = sum(int(wp.size) * wp.dtype.itemsize for wp in w_pad)
    if weight_bytes > _MAX_RESIDENT_WEIGHT_BYTES:
        # TODO(synk): fall back to a per-layer K/N-tiled matmul pipeline for very
        # large MLPs instead of the fully-resident fused kernel (v7x VMEM budget).
        raise NotImplementedError(
            f"Resident weights ({weight_bytes} B) exceed fused-kernel VMEM budget.")

    # --- batch tiling: sublane-full tiles, pipelined across the grid ---
    if block_batch is None:
        block_batch = 256 if B >= 256 else _round_up(B, _SUBLANE)
    tb = min(_round_up(block_batch, _SUBLANE), _round_up(B, _SUBLANE))
    b_pad = _round_up(B, tb)
    grid = (pl.cdiv(b_pad, tb),)

    x_p = jnp.zeros((b_pad, in_pads[0]), x.dtype).at[:B, :x_dim].set(x)

    # Streaming activation/output tiles walk the batch axis; weights/biases stay put.
    in_specs = [pl.BlockSpec((tb, in_pads[0]), lambda i: (i, 0))]
    for ip, op in zip(in_pads, out_pads):
        in_specs.append(pl.BlockSpec((ip, op), lambda i: (0, 0)))
    in_specs.append(pl.BlockSpec((1, total_b), lambda i: (0, 0)))
    out_spec = pl.BlockSpec((tb, out_pads[-1]), lambda i: (i, 0))

    kernel = _make_mlp_kernel(num_layers, out_pads, bias_offsets, compute_dtype)

    out_p = pl.pallas_call(
        kernel,
        out_shape=jax.ShapeDtypeStruct((b_pad, out_pads[-1]), jnp.float32),
        grid_spec=pltpu.PrefetchScalarGridSpec(
            num_scalar_prefetch=0,
            grid=grid,
            in_specs=in_specs,
            out_specs=out_spec,
        ),
        compiler_params=pltpu.CompilerParams(
            dimension_semantics=("parallel",),       # megacore-shardable batch axis
            vmem_limit_bytes=64 * 1024 * 1024,
        ),
    )(x_p, *w_pad, b_cat)

    return out_p[:B, :y_dim]


def init_mlp_params(key, x_dim, hid_sizes, y_dim):
    """Deterministic init matching nn.Linear default U(-1/sqrt(fan_in), +1/sqrt(fan_in))."""
    dims = [x_dim] + list(hid_sizes) + [y_dim]
    weights, biases = [], []
    for i in range(len(dims) - 1):
        fan_in, fan_out = dims[i], dims[i + 1]
        key, kw, kb = jax.random.split(key, 3)
        bound = 1.0 / jnp.sqrt(jnp.float32(fan_in))
        # Stored as (in, out) == torch weight (out, in) transposed.
        w = jax.random.uniform(kw, (fan_in, fan_out), jnp.float32, -bound, bound)
        b = jax.random.uniform(kb, (fan_out,), jnp.float32, -bound, bound)
        weights.append(w)
        biases.append(b)
    return weights, biases


def mlp_reference(x, weights, biases):
    """Plain-JAX reference for correctness checking."""
    h = x
    n = len(weights)
    for i, (w, b) in enumerate(zip(weights, biases)):
        h = h @ w + b
        if i < n - 1:
            h = jnp.maximum(h, 0.0)
    return h


if __name__ == "__main__":
    key = jax.random.PRNGKey(0)

    # --- Case 1: small shapes matching MLPRegressor usage (f32, exact check) ---
    batch, x_dim, hid_sizes, y_dim = 2, 16, [32, 32], 8
    key, kx = jax.random.split(key)
    x = jax.random.normal(kx, (batch, x_dim), dtype=jnp.float32)
    weights, biases = init_mlp_params(key, x_dim, hid_sizes, y_dim)

    y = jax.block_until_ready(mlp_forward(x, weights, biases))
    y_ref = mlp_reference(x, weights, biases)
    assert y.shape == (batch, y_dim)
    assert jnp.allclose(y, y_ref, atol=1e-5, rtol=1e-5), "Pallas MLP mismatch (f32, small)"

    # --- Case 2: larger batch exercising batch tiling (grid > 1) ---
    batch2, x_dim2, hid2, y_dim2 = 512, 32, [64, 64], 16
    key, kx2 = jax.random.split(key)
    x2 = jax.random.normal(kx2, (batch2, x_dim2), dtype=jnp.float32)
    weights2, biases2 = init_mlp_params(key, x_dim2, hid2, y_dim2)

    y2 = jax.block_until_ready(mlp_forward(x2, weights2, biases2))
    y2_ref = mlp_reference(x2, weights2, biases2)
    assert y2.shape == (batch2, y_dim2)
    assert jnp.allclose(y2, y2_ref, atol=1e-5, rtol=1e-5), "Pallas MLP mismatch (f32, tiled)"

    # --- Case 3: bf16 weight/activation path (f32 accumulation), loose tolerance ---
    y2_bf16 = jax.block_until_ready(
        mlp_forward(x2, weights2, biases2, compute_dtype=jnp.bfloat16))
    assert jnp.allclose(y2_bf16, y2_ref, atol=5e-2, rtol=5e-2), "Pallas MLP mismatch (bf16)"

    print("KERNEL_OK")
</pallas_src>

<mosaic_0001>
module attributes {stable_mosaic.version = 11 : i64} {
  func.func @kernel(%arg0: i32, %arg1: memref<8x128xf32, #tpu.memory_space<vmem>>, %arg2: memref<128x128xf32, #tpu.memory_space<vmem>>, %arg3: memref<128x128xf32, #tpu.memory_space<vmem>>, %arg4: memref<128x128xf32, #tpu.memory_space<vmem>>, %arg5: memref<1x384xf32, #tpu.memory_space<vmem>>, %arg6: memref<8x128xf32, #tpu.memory_space<vmem>>) attributes {dimension_semantics = [#tpu.dimension_semantics<parallel>], iteration_bounds = array<i64: 1>, scalar_prefetch = 0 : i64, scratch_operands = 0 : i64, tpu.core_type = #tpu.core_type<tc>, window_params = [{transform_indices = @transform_0, window_bounds = array<i64: 8, 128>}, {pipeline_mode = #tpu.pipeline_mode<synchronous>, transform_indices = @transform_1, window_bounds = array<i64: 128, 128>}, {pipeline_mode = #tpu.pipeline_mode<synchronous>, transform_indices = @transform_2, window_bounds = array<i64: 128, 128>}, {pipeline_mode = #tpu.pipeline_mode<synchronous>, transform_indices = @transform_3, window_bounds = array<i64: 128, 128>}, {pipeline_mode = #tpu.pipeline_mode<synchronous>, transform_indices = @transform_4, window_bounds = array<i64: 1, 384>}, {transform_indices = @transform_5, window_bounds = array<i64: 8, 128>}]} {
    %c0 = arith.constant 0 : index
    %c0_0 = arith.constant 0 : index
    %0 = vector.load %arg1[%c0, %c0_0] : memref<8x128xf32, #tpu.memory_space<vmem>>, vector<8x128xf32>
    %c0_1 = arith.constant 0 : index
    %c0_2 = arith.constant 0 : index
    %1 = vector.load %arg2[%c0_1, %c0_2] : memref<128x128xf32, #tpu.memory_space<vmem>>, vector<128x128xf32>
    %c0_3 = arith.constant 0 : index
    %c0_4 = arith.constant 0 : index
    %2 = vector.load %arg5[%c0_3, %c0_4] : memref<1x384xf32, #tpu.memory_space<vmem>>, vector<1x128xf32>
    %cst = arith.constant dense<0.000000e+00> : vector<8x128xf32>
    %3 = tpu.matmul %0, %1, %cst {dimension_numbers = #tpu.dot_dimension_numbers<[1], [0], [0], [1], [0, 0, 1, 1], [], []>} : vector<8x128xf32>, vector<128x128xf32>, vector<8x128xf32> -> vector<8x128xf32>
    %4 = vector.broadcast %2 : vector<1x128xf32> to vector<8x128xf32>
    %5 = arith.addf %3, %4 : vector<8x128xf32>
    %cst_5 = arith.constant 0.000000e+00 : f32
    %6 = vector.broadcast %cst_5 : f32 to vector<8x128xf32>
    %7 = arith.maximumf %5, %6 : vector<8x128xf32>
    %c0_6 = arith.constant 0 : index
    %c0_7 = arith.constant 0 : index
    %8 = vector.load %arg3[%c0_6, %c0_7] : memref<128x128xf32, #tpu.memory_space<vmem>>, vector<128x128xf32>
    %c0_8 = arith.constant 0 : index
    %c128 = arith.constant 128 : index
    %9 = vector.load %arg5[%c0_8, %c128] : memref<1x384xf32, #tpu.memory_space<vmem>>, vector<1x128xf32>
    %cst_9 = arith.constant dense<0.000000e+00> : vector<8x128xf32>
    %10 = tpu.matmul %7, %8, %cst_9 {dimension_numbers = #tpu.dot_dimension_numbers<[1], [0], [0], [1], [0, 0, 1, 1], [], []>} : vector<8x128xf32>, vector<128x128xf32>, vector<8x128xf32> -> vector<8x128xf32>
    %11 = vector.broadcast %9 : vector<1x128xf32> to vector<8x128xf32>
    %12 = arith.addf %10, %11 : vector<8x128xf32>
    %cst_10 = arith.constant 0.000000e+00 : f32
    %13 = vector.broadcast %cst_10 : f32 to vector<8x128xf32>
    %14 = arith.maximumf %12, %13 : vector<8x128xf32>
    %c0_11 = arith.constant 0 : index
    %c0_12 = arith.constant 0 : index
    %15 = vector.load %arg4[%c0_11, %c0_12] : memref<128x128xf32, #tpu.memory_space<vmem>>, vector<128x128xf32>
    %c0_13 = arith.constant 0 : index
    %c256 = arith.constant 256 : index
    %16 = vector.load %arg5[%c0_13, %c256] : memref<1x384xf32, #tpu.memory_space<vmem>>, vector<1x128xf32>
    %cst_14 = arith.constant dense<0.000000e+00> : vector<8x128xf32>
    %17 = tpu.matmul %14, %15, %cst_14 {dimension_numbers = #tpu.dot_dimension_numbers<[1], [0], [0], [1], [0, 0, 1, 1], [], []>} : vector<8x128xf32>, vector<128x128xf32>, vector<8x128xf32> -> vector<8x128xf32>
    %18 = vector.broadcast %16 : vector<1x128xf32> to vector<8x128xf32>
    %19 = arith.addf %17, %18 : vector<8x128xf32>
    %c0_15 = arith.constant 0 : index
    %c0_16 = arith.constant 0 : index
    %20 = vector.load %arg6[%c0_15, %c0_16] : memref<8x128xf32, #tpu.memory_space<vmem>>, vector<8x128xf32>
    tpu.vector_store %arg6[%c0_15, %c0_16], %19 {strides = array<i32>} : memref<8x128xf32, #tpu.memory_space<vmem>>, vector<8x128xf32>,
    return
  }
  func.func @transform_0(%arg0: i32) -> (i32, i32) {
    %c0_i32 = arith.constant 0 : i32
    %c0_i32_0 = arith.constant 0 : i32
    return %arg0, %c0_i32 : i32, i32
  }
  func.func @transform_1(%arg0: i32) -> (i32, i32) {
    %c0_i32 = arith.constant 0 : i32
    %c0_i32_0 = arith.constant 0 : i32
    %c0_i32_1 = arith.constant 0 : i32
    return %c0_i32, %c0_i32_0 : i32, i32
  }
  func.func @transform_2(%arg0: i32) -> (i32, i32) {
    %c0_i32 = arith.constant 0 : i32
    %c0_i32_0 = arith.constant 0 : i32
    %c0_i32_1 = arith.constant 0 : i32
    return %c0_i32, %c0_i32_0 : i32, i32
  }
  func.func @transform_3(%arg0: i32) -> (i32, i32) {
    %c0_i32 = arith.constant 0 : i32
    %c0_i32_0 = arith.constant 0 : i32
    %c0_i32_1 = arith.constant 0 : i32
    return %c0_i32, %c0_i32_0 : i32, i32
  }
  func.func @transform_4(%arg0: i32) -> (i32, i32) {
    %c0_i32 = arith.constant 0 : i32
    %c0_i32_0 = arith.constant 0 : i32
    %c0_i32_1 = arith.constant 0 : i32
    return %c0_i32, %c0_i32_0 : i32, i32
  }
  func.func @transform_5(%arg0: i32) -> (i32, i32) {
    %c0_i32 = arith.constant 0 : i32
    %c0_i32_0 = arith.constant 0 : i32
    return %arg0, %c0_i32 : i32, i32
  }
}

</mosaic_0001>

<bundles_post_ra>
// kernel: tpu_custom_call.1
= control target key start
LH: loop header
LB: loop body
LE: loop exit
PB: predicated region body
PF: predicated region fallthrough
CT: control target
= control target key end

     0   :  { %10 = vsyncpa [#allocation3], 0  ;;  %s919_s0 = inlined_call_operand.hbm [shape: f32[8,128], index: 0, kind: input, shape index: {}]   ;;  %s920_s1 = inlined_call_operand.hbm [shape: f32[128,128], index: 1, kind: input, shape index: {}]   ;;  %s921_s2 = inlined_call_operand.hbm [shape: f32[128,128], index: 2, kind: input, shape index: {}]   ;;  %s922_s3 = inlined_call_operand.hbm [shape: f32[128,128], index: 3, kind: input, shape index: {}]   ;;  %s923_s4 = inlined_call_operand.hbm [shape: f32[1,384], index: 4, kind: input, shape index: {}]   ;;  %s924_s5 = inlined_call_operand.hbm [shape: f32[8,128], index: 5, kind: output, shape index: {}]  }
   0x1   :  { %11 = vsyncpa [#allocation6], 0 }
   0x2   :  { %12 = vsyncpa [#allocation9], 0 }
   0x3   :  { %13 = vsyncpa [#allocation4], 0  ;;  %s767_s18 = smov [#allocation5]   ;;  %s627_s22 = scalar_lea.hbm %s920_s1, 2048 }
   0x4   :  { %s29_s19 = sshll.u32 %s767_s18, 4  ;;  %p628_p0 = scmp.ne.s32.totalorder %s920_s1, %s627_s22  ;;  %s30_s19 = int_to_ptr.vmem [resolvable:$true] %s29_s19 }
   0x5   :  { %p631_p1 = scmp.lt.u32.totalorder %s627_s22, %s920_s1 }
   0x7   :  { %p633_p2 = pnand %p631_p1, %p628_p0 }
   0x9   :  { %636 = shalt.err (!%p633_p2)
}
   0xa   :  { %s637_s27 = scalar_lea.vmem %s30_s19, 2048  ;;  %p642_p4 = scmp.lt.s32.totalorder %s30_s19, %s30_s19 }
   0xb   :  { %p638_p3 = scmp.ne.s32.totalorder %s30_s19, %s637_s27  ;;  %p643_p5 = scmp.lt.s32.totalorder %s637_s27, %s637_s27 }
   0xd   :  { %p644_p6 = por %p643_p5, %p642_p4 }
   0xf   :  { %p645_p7 = pnand %p644_p6, %p638_p3 }
  0x11   :  { %648 = shalt.err (!%p645_p7)
}
  0x12   :  { %s768_s28 = smov 128   ;;  %s769_s29 = smov 8  }
  0x13   :  { %35 = dma.hbm_to_vmem [thread:$0]  %s920_s1, 2048, %s30_s19, [#allocation6], %s768_s28, %s768_s28, %s769_s29  }
  0x14   :  { %s770_s7 = smov [#allocation8]   ;;  %s771_s9 = smov [#allocation2]  }
  0x15   :  { %s53_s8 = sshll.u32 %s770_s7, 4  ;;  %s20_s10 = sshll.u32 %s771_s9, 4  ;;  %s54_s8 = int_to_ptr.vmem [resolvable:$true] %s53_s8  ;;  %s21_s10 = int_to_ptr.vmem [resolvable:$true] %s20_s10 }
  0x16   :  { %s649_s13 = scalar_lea.hbm %s922_s3, 2048 }
  0x17   :  { %p650_p8 = scmp.ne.s32.totalorder %s922_s3, %s649_s13  ;;  %p653_p9 = scmp.lt.u32.totalorder %s649_s13, %s922_s3 }
  0x19   :  { %p655_p10 = pnand %p653_p9, %p650_p8 }
  0x1b   :  { %658 = shalt.err (!%p655_p10)
}
  0x1c   :  { %s659_s1 = scalar_lea.vmem %s54_s8, 2048  ;;  %p664_p12 = scmp.lt.s32.totalorder %s54_s8, %s54_s8 }
  0x1d   :  { %p660_p11 = scmp.ne.s32.totalorder %s54_s8, %s659_s1  ;;  %p665_p13 = scmp.lt.s32.totalorder %s659_s1, %s659_s1 }
  0x1f   :  { %p666_p0 = por %p665_p13, %p664_p12 }
  0x21   :  { %p667_p1 = pnand %p666_p0, %p660_p11 }
  0x23   :  { %670 = shalt.err (!%p667_p1)
}
  0x24   :  { %59 = dma.hbm_to_vmem [thread:$0]  %s922_s3, 2048, %s54_s8, [#allocation9], %s768_s28, %s768_s28, %s769_s29  }
  0x25   :  { %s671_s22 = scalar_lea.hbm %s919_s0, 128 }
  0x26   :  { %p672_p2 = scmp.ne.s32.totalorder %s919_s0, %s671_s22  ;;  %p675_p3 = scmp.lt.u32.totalorder %s671_s22, %s919_s0 }
  0x28   :  { %p677_p4 = pnand %p675_p3, %p672_p2 }
  0x2a   :  { %680 = shalt.err (!%p677_p4)
}
  0x2b   :  { %s681_s27 = scalar_lea.vmem %s21_s10, 128  ;;  %p686_p6 = scmp.lt.s32.totalorder %s21_s10, %s21_s10 }
  0x2c   :  { %p682_p5 = scmp.ne.s32.totalorder %s21_s10, %s681_s27  ;;  %p687_p7 = scmp.lt.s32.totalorder %s681_s27, %s681_s27 }
  0x2e   :  { %p688_p8 = por %p687_p7, %p686_p6 }
  0x30   :  { %p689_p9 = pnand %p688_p8, %p682_p5 }
  0x32   :  { %692 = shalt.err (!%p689_p9)
}
  0x33   :  { %23 = dma.hbm_to_vmem [thread:$0]  %s919_s0, 128, %s21_s10, [#allocation3]  }
  0x34   :  { %s772_s6 = smov [#allocation7]   ;;  %s773_s8 = smov [#allocation10]  }
  0x35   :  { %s41_s7 = sshll.u32 %s772_s6, 4  ;;  %s66_s9 = sshll.u32 %s773_s8, 4  ;;  %s42_s7 = int_to_ptr.vmem [resolvable:$true] %s41_s7  ;;  %s67_s9 = int_to_ptr.vmem [resolvable:$true] %s66_s9 }
  0x36   :  { %s693_s13 = scalar_lea.hbm %s921_s2, 2048 }
  0x37   :  { %p694_p10 = scmp.ne.s32.totalorder %s921_s2, %s693_s13  ;;  %p697_p11 = scmp.lt.u32.totalorder %s693_s13, %s921_s2 }
  0x39   :  { %p699_p12 = pnand %p697_p11, %p694_p10 }
  0x3b   :  { %702 = shalt.err (!%p699_p12)
}
  0x3c   :  { %s703_s0 = scalar_lea.vmem %s42_s7, 2048  ;;  %p708_p0 = scmp.lt.s32.totalorder %s42_s7, %s42_s7 }
  0x3d   :  { %p704_p13 = scmp.ne.s32.totalorder %s42_s7, %s703_s0  ;;  %p709_p1 = scmp.lt.s32.totalorder %s703_s0, %s703_s0 }
  0x3f   :  { %p710_p2 = por %p709_p1, %p708_p0 }
  0x41   :  { %p711_p3 = pnand %p710_p2, %p704_p13 }
  0x43   :  { %714 = shalt.err (!%p711_p3)
}
  0x44   :  { %47 = dma.hbm_to_vmem [thread:$0]  %s921_s2, 2048, %s42_s7, [#allocation6], %s768_s28, %s768_s28, %s769_s29  }
  0x45   :  { %s715_s20 = scalar_lea.hbm %s923_s4, 48 }
  0x46   :  { %p716_p4 = scmp.ne.s32.totalorder %s923_s4, %s715_s20  ;;  %p719_p5 = scmp.lt.u32.totalorder %s715_s20, %s923_s4 }
  0x48   :  { %p721_p6 = pnand %p719_p5, %p716_p4 }
  0x4a   :  { %724 = shalt.err (!%p721_p6)
}
  0x4b   :  { %s725_s25 = scalar_lea.vmem %s67_s9, 48  ;;  %s729_s26 = scalar_lea.vmem %s67_s9, 64 }
  0x4c   :  { %p726_p7 = scmp.ne.s32.totalorder %s67_s9, %s725_s25  ;;  %p730_p8 = scmp.lt.s32.totalorder %s67_s9, %s67_s9 }
  0x4d   :  { %p731_p9 = scmp.lt.s32.totalorder %s729_s26, %s725_s25 }
  0x4f   :  { %p732_p10 = por %p731_p9, %p730_p8 }
  0x51   :  { %p733_p11 = pnand %p732_p10, %p726_p7 }
  0x53   :  { %736 = shalt.err (!%p733_p11)
}
  0x54   :  { %69 = dma.hbm_to_vmem [thread:$0]  %s923_s4, 48, %s67_s9, [#allocation9]  }
  0x55   :  { %759 = dma.done.wait [#allocation3], 128  }
  0x56   :  { %760 = vsyncadd [#allocation3], 4294967168 }
  0x57   :  { %761 = dma.done.wait [#allocation6], 4096  }
  0x58   :  { %762 = vsyncadd [#allocation6], 4294963200 }
  0x59   :  { %763 = dma.done.wait [#allocation9], 2096  }
  0x5a   :  { %764 = vsyncadd [#allocation9], 4294965200  ;;  %v774_v0 = vmov 0.0|0.0   ;;  %vm775_vm0 = vmmov 0   ;;  %v776_v1 = vmov 0.0   ;;  %v86_v2 = vld [vmem:[#allocation5] sm:$0xff] }
  0x5b   :  { %544 = vmatprep.subr.bf16.mxu0 %v774_v0  ;;  %471 = vmatprep.mubr.msk.f32.mxu0 %vm775_vm0, %v776_v1  ;;  %v87_v3 = vld [vmem:[#allocation5 + $0x8] sm:$0xff]  ;;  %v88_v4 = vld [vmem:[#allocation5 + $0x10] sm:$0xff]  ;;  %v89_v6 = vld [vmem:[#allocation5 + $0x18] sm:$0xff]  ;;  %s777_s4 = smov [#allocation11]  }
  0x5c   :  { %568 = vmatprep.subr.bf16.mxu1 %v774_v0  ;;  %506 = vmatprep.mubr.msk.f32.mxu1 %vm775_vm0, %v776_v1  ;;  %v545_v5 = vpack.c.bf16 %v87_v3, %v86_v2  ;;  %v548_v7 = vpack.c.bf16 %v89_v6, %v88_v4  ;;  %v90_v8 = vld [vmem:[#allocation5 + $0x20] sm:$0xff]  ;;  %v91_v9 = vld [vmem:[#allocation5 + $0x28] sm:$0xff]  ;;  %v182_v12 = vld [vmem:[#allocation7 + $0x10] sm:$0xff]  ;;  %s374_s29 = sshll.u32 %s777_s4, 4  ;;  %s375_s29 = int_to_ptr.vmem [resolvable:$true] %s374_s29 }
  0x5d   :  { %v180_v10 = vld [vmem:[#allocation7] sm:$0xff]  ;;  %v181_v11 = vld [vmem:[#allocation7 + $0x8] sm:$0xff]  ;;  %v183_v13 = vld [vmem:[#allocation7 + $0x18] sm:$0xff]  ;;  %v551_v14 = vpack.c.bf16 %v91_v9, %v90_v8  ;;  %s737_s27 = scalar_lea.vmem %s375_s29, 128  ;;  %p742_p13 = scmp.lt.s32.totalorder %s375_s29, %s375_s29 }
  0x5e   :  { %546 = vmatpush3.bf16.msra.mxu0 %v545_v5  ;;  %v569_v15 = vpack.c.bf16 %v181_v11, %v180_v10  ;;  %v92_v16 = vld [vmem:[#allocation5 + $0x30] sm:$0xff]  ;;  %v93_v17 = vld [vmem:[#allocation5 + $0x38] sm:$0xff]  ;;  %v572_v18 = vpack.c.bf16 %v183_v13, %v182_v12  ;;  %v184_v19 = vld [vmem:[#allocation7 + $0x20] sm:$0xff]  ;;  %p738_p12 = scmp.ne.s32.totalorder %s375_s29, %s737_s27  ;;  %p743_p0 = scmp.lt.s32.totalorder %s737_s27, %s737_s27 }
  0x5f   :  { %547 = vmatprep.subr.bf16.mxu0 %v774_v0  ;;  %v185_v20 = vld [vmem:[#allocation7 + $0x28] sm:$0xff]  ;;  %v554_v21 = vpack.c.bf16 %v93_v17, %v92_v16  ;;  %v94_v22 = vld [vmem:[#allocation5 + $0x40] sm:$0xff]  ;;  %v186_v25 = vld [vmem:[#allocation7 + $0x30] sm:$0xff] }
  0x60   :  { %570 = vmatpush3.bf16.msra.mxu1 %v569_v15  ;;  %v95_v23 = vld [vmem:[#allocation5 + $0x48] sm:$0xff]  ;;  %v575_v24 = vpack.c.bf16 %v185_v20, %v184_v19  ;;  %v187_v26 = vld [vmem:[#allocation7 + $0x38] sm:$0xff]  ;;  %v96_v28 = vld [vmem:[#allocation5 + $0x50] sm:$0xff]  ;;  %p744_p1 = por %p743_p0, %p742_p13 }
  0x61   :  { %571 = vmatprep.subr.bf16.mxu1 %v774_v0  ;;  %v557_v27 = vpack.c.bf16 %v95_v23, %v94_v22  ;;  %v97_v29 = vld [vmem:[#allocation5 + $0x58] sm:$0xff]  ;;  %v578_v30 = vpack.c.bf16 %v187_v26, %v186_v25  ;;  %v188_v31 = vld [vmem:[#allocation7 + $0x40] sm:$0xff]  ;;  %v189_v32 = vld [vmem:[#allocation7 + $0x48] sm:$0xff] }
  0x62   :  { %549 = vmatpush3.bf16.msra.mxu0 %v548_v7  ;;  %v560_v33 = vpack.c.bf16 %v97_v29, %v96_v28  ;;  %v98_v34 = vld [vmem:[#allocation5 + $0x60] sm:$0xff]  ;;  %v99_v35 = vld [vmem:[#allocation5 + $0x68] sm:$0xff]  ;;  %v581_v36 = vpack.c.bf16 %v189_v32, %v188_v31  ;;  %v190_v37 = vld [vmem:[#allocation7 + $0x50] sm:$0xff]  ;;  %p745_p2 = pnand %p744_p1, %p738_p12 }
  0x63   :  { %550 = vmatprep.subr.bf16.mxu0 %v774_v0  ;;  %v191_v38 = vld [vmem:[#allocation7 + $0x58] sm:$0xff]  ;;  %v563_v39 = vpack.c.bf16 %v99_v35, %v98_v34  ;;  %v100_v40 = vld [vmem:[#allocation5 + $0x70] sm:$0xff]  ;;  %v192_v43 = vld [vmem:[#allocation7 + $0x60] sm:$0xff] }
  0x64   :  { %573 = vmatpush3.bf16.msra.mxu1 %v572_v18  ;;  %v101_v41 = vld [vmem:[#allocation5 + $0x78] sm:$0xff]  ;;  %v584_v42 = vpack.c.bf16 %v191_v38, %v190_v37  ;;  %v193_v44 = vld [vmem:[#allocation7 + $0x68] sm:$0xff]  ;;  %v194_v48 = vld [vmem:[#allocation7 + $0x70] sm:$0xff] }
  0x65   :  { %574 = vmatprep.subr.bf16.mxu1 %v774_v0  ;;  %v566_v45 = vpack.c.bf16 %v101_v41, %v100_v40  ;;  %v587_v46 = vpack.c.bf16 %v193_v44, %v192_v43  ;;  %v85_v47 = vld [vmem:[#allocation2] sm:$0xff]  ;;  %v274_v51 = vld [vmem:[#allocation8] sm:$0xff]  ;;  %v275_v52 = vld [vmem:[#allocation8 + $0x8] sm:$0xff] }
  0x66   :  { %552 = vmatpush3.bf16.msra.mxu0 %v551_v14  ;;  %v195_v49 = vld [vmem:[#allocation7 + $0x78] sm:$0xff]  ;;  %v276_v53 = vld [vmem:[#allocation8 + $0x10] sm:$0xff]  ;;  %v593_v54 = vpack.c.bf16 %v275_v52, %v274_v51  ;;  %v278_v57 = vld [vmem:[#allocation8 + $0x20] sm:$0xff] }
  0x67   :  { %553 = vmatprep.subr.bf16.mxu0 %v774_v0  ;;  %v590_v50 = vpack.c.bf16 %v195_v49, %v194_v48  ;;  %v277_v55 = vld [vmem:[#allocation8 + $0x18] sm:$0xff]  ;;  %v279_v58 = vld [vmem:[#allocation8 + $0x28] sm:$0xff]  ;;  %v280_v60 = vld [vmem:[#allocation8 + $0x30] sm:$0xff] }
  0x68   :  { %576 = vmatpush3.bf16.msra.mxu1 %v575_v24  ;;  %v596_v56 = vpack.c.bf16 %v277_v55, %v276_v53  ;;  %v599_v59 = vpack.c.bf16 %v279_v58, %v278_v57  ;;  %v281_v61 = vld [vmem:[#allocation8 + $0x38] sm:$0xff]  ;;  %v282_v63 = vld [vmem:[#allocation8 + $0x40] sm:$0xff]  ;;  %v284_v3 = vld [vmem:[#allocation8 + $0x50] sm:$0xff] }
  0x69   :  { %577 = vmatprep.subr.bf16.mxu1 %v774_v0  ;;  %v602_v62 = vpack.c.bf16 %v281_v61, %v280_v60  ;;  %v285_v4 = vld [vmem:[#allocation8 + $0x58] sm:$0xff]  ;;  %v286_v6 = vld [vmem:[#allocation8 + $0x60] sm:$0xff]  ;;  %v287_v7 = vld [vmem:[#allocation8 + $0x68] sm:$0xff] }
  0x6a   :  { %555 = vmatpush3.bf16.msra.mxu0 %v554_v21  ;;  %v608_v5 = vpack.c.bf16 %v285_v4, %v284_v3  ;;  %v611_v8 = vpack.c.bf16 %v287_v7, %v286_v6  ;;  %v385_v9 = vld [vmem:[#allocation10] ss:$0 sm:$0xff]  ;;  %v288_v14 = vld [vmem:[#allocation8 + $0x70] sm:$0xff]  ;;  %v289_v15 = vld [vmem:[#allocation8 + $0x78] sm:$0xff] }
  0x6b   :  { %556 = vmatprep.subr.bf16.mxu0 %v774_v0  ;;  %v614_v16 = vpack.c.bf16 %v289_v15, %v288_v14  ;;  %v386_v17 = vld [vmem:[#allocation10 + $0x1] ss:$0 sm:$0xff]  ;;  %v387_v22 = vld [vmem:[#allocation10 + $0x2] ss:$0 sm:$0xff] }
  0x6c   :  { %579 = vmatpush3.bf16.msra.mxu1 %v578_v30 }
  0x6d   :  { %580 = vmatprep.subr.bf16.mxu1 %v774_v0 }
  0x6e   :  { %558 = vmatpush3.bf16.msra.mxu0 %v557_v27 }
  0x6f   :  { %559 = vmatprep.subr.bf16.mxu0 %v774_v0 }
  0x70   :  { %582 = vmatpush3.bf16.msra.mxu1 %v581_v36 }
  0x71   :  { %583 = vmatprep.subr.bf16.mxu1 %v774_v0 }
  0x72   :  { %561 = vmatpush3.bf16.msra.mxu0 %v560_v33 }
  0x73   :  { %562 = vmatprep.subr.bf16.mxu0 %v774_v0 }
  0x74   :  { %585 = vmatpush3.bf16.msra.mxu1 %v584_v42 }
  0x75   :  { %586 = vmatprep.subr.bf16.mxu1 %v774_v0 }
  0x76   :  { %564 = vmatpush3.bf16.msra.mxu0 %v563_v39 }
  0x77   :  { %565 = vmatprep.subr.bf16.mxu0 %v774_v0 }
  0x78   :  { %588 = vmatpush3.bf16.msra.mxu1 %v587_v46 }
  0x79   :  { %589 = vmatprep.subr.bf16.mxu1 %v774_v0 }
  0x7a   :  { %567 = vmatpush3.bf16.msra.mxu0 %v566_v45 }
  0x7b   :  { %592 = vmatprep.subr.bf16.mxu0 %v774_v0 }
  0x7c   :  { %591 = vmatpush3.bf16.msra.mxu1 %v590_v50 }
  0x7d   :  { %472 = vmatmul.mubr.f32.vlgmr.msra.gmra.mrb[0].mxu0 %v85_v47 }
  0x7e   :  { %541 = vmatprep.mubr.msk.f32.mxu0 %vm775_vm0, %v776_v1  ;;  %594 = vmatpush3.bf16.msra.mxu0 %v593_v54  ;;  %v283_v1 = vld [vmem:[#allocation8 + $0x48] sm:$0xff] }
  0x7f   :  { %595 = vmatprep.subr.bf16.mxu0 %v774_v0  ;;  %v605_v2 = vpack.c.bf16 %v283_v1, %v282_v63 }
  0x82   :  { %597 = vmatpush3.bf16.msra.mxu0 %v596_v56 }
  0x83   :  { %598 = vmatprep.subr.bf16.mxu0 %v774_v0 }
  0x86   :  { %600 = vmatpush3.bf16.msra.mxu0 %v599_v59 }
  0x87   :  { %601 = vmatprep.subr.bf16.mxu0 %v774_v0 }
  0x8a   :  { %603 = vmatpush3.bf16.msra.mxu0 %v602_v62 }
  0x8b   :  { %604 = vmatprep.subr.bf16.mxu0 %v774_v0 }
  0x8e   :  { %606 = vmatpush3.bf16.msra.mxu0 %v605_v2 }
  0x8f   :  { %607 = vmatprep.subr.bf16.mxu0 %v774_v0 }
  0x92   :  { %609 = vmatpush3.bf16.msra.mxu0 %v608_v5 }
  0x93   :  { %610 = vmatprep.subr.bf16.mxu0 %v774_v0 }
  0x96   :  { %612 = vmatpush3.bf16.msra.mxu0 %v611_v8 }
  0x97   :  { %613 = vmatprep.subr.bf16.mxu0 %v774_v0 }
  0x9a   :  { %615 = vmatpush3.bf16.msra.mxu0 %v614_v16 }
 0x150   :  { %v175_v10 = vpop.f32.mrb[0].mxu0 }
 0x151   :  { %v176_v11 = vadd.f32 %v385_v9, %v175_v10  ;;  %v473_v12 = vpop.f32.mrb[1].mxu0 }
 0x153   :  { %v179_v13 = vmax.f32 %v176_v11, 0.0 }
 0x155   :  { %507 = vmatmul.mubr.f32.vlgmr.msra.gmra.mrb[0].mxu1 %v179_v13 }
 0x228   :  { %v269_v18 = vpop.f32.mrb[0].mxu1 }
 0x229   :  { %v270_v19 = vadd.f32 %v386_v17, %v269_v18  ;;  %v508_v20 = vpop.f32.mrb[1].mxu1 }
 0x22b   :  { %v273_v21 = vmax.f32 %v270_v19, 0.0 }
 0x22d   :  { %542 = vmatmul.mubr.f32.vlgmr.msra.gmra.mrb[2].mxu0 %v273_v21 }
 0x300   :  { %v363_v0 = vpop.f32.mrb[2].mxu0 }
 0x301   :  { %v364_v23 = vadd.f32 %v387_v22, %v363_v0  ;;  %v543_v24 = vpop.f32.mrb[3].mxu0 }
 0x303   :  { %367 = vst [vmem:[#allocation11] sm:$0xff] %v364_v23 }
 0x304   :  { %748 = shalt.err (!%p745_p2)
}
 0x305   :  { %s749_s6 = scalar_lea.hbm %s924_s5, 128 }
 0x306   :  { %p750_p3 = scmp.ne.s32.totalorder %s924_s5, %s749_s6  ;;  %p753_p4 = scmp.lt.u32.totalorder %s749_s6, %s924_s5 }
 0x308   :  { %p755_p5 = pnand %p753_p4, %p750_p3 }
 0x30a   :  { %758 = shalt.err (!%p755_p5)
}
 0x30b   :  { %377 = dma.vmem_to_hbm [thread:$0]  %s375_s29, 128, %s924_s5, [#allocation4]  }
 0x30c   :  { %765 = dma.done.wait [#allocation4], 128  }
 0x30d   :  { %766 = vsyncadd [#allocation4], 4294967168 }
 0x30e   :  { %381 = vsyncpa [#allocation3], 1 }
 0x30f   :  { %382 = vsyncpa [#allocation6], 1 }
 0x310   :  { %383 = vsyncpa [#allocation9], 1 }
 0x311   :  { %384 = vsyncpa [#allocation4], 1 }

</bundles_post_ra>
